<compile_context>
chip_gen: v6e
topology: v6e:2x2x1
jax: 0.10.0
libtpu: 0.0.40
codegen_flags: <defaults>
</compile_context>

<pallas_src>
import jax
import jax.numpy as jnp
from jax.experimental import pallas as pl
from jax.experimental.pallas import tpu as pltpu

AGG_NUM = 4                 # TODO(synk): cfg.agg_num not given in the snippet; assumed 4.
D_IN = AGG_NUM * 2 * 17     # 136
D_HID = 17 * 10             # 170
D_OUT = 17 * 2              # 34
MAX_TB = 256                # batch-tile rows: deep, even grid for v7x megacore


def _round_up(n, m):
    return ((n + m - 1) // m) * m


def aggregation_kernel(x_ref, w_ref, b_ref, o_ref):
    # x_ref: (TB, D_IN)  w_ref: (D_IN, D_OUT)  b_ref: (1, D_OUT)  o_ref: (TB, D_OUT)
    o_ref[...] = (
        jnp.dot(x_ref[...], w_ref[...], preferred_element_type=jnp.float32)
        + b_ref[...]
    ).astype(o_ref.dtype)


def fold_params(w1, b1, w2, b2, *, compute_dtype=jnp.float32):
    """One-time algebraic fold of the two linears (exact: no activation between).

    Call once at parameter-build time; pass the result to aggregation_forward.
    compute_dtype controls the folded weight dtype (use bf16 only if x arrives
    natively bf16 upstream); bias stays f32 for the accumulate/add.
    """
    hp = jax.lax.Precision.HIGHEST
    w1f, w2f = w1.astype(jnp.float32), w2.astype(jnp.float32)
    w_comb = jnp.dot(w1f, w2f, precision=hp)                                  # (D_IN, D_OUT)
    b_comb = jnp.dot(b1.astype(jnp.float32), w2f, precision=hp) + b2          # (D_OUT,)
    return w_comb.astype(compute_dtype), b_comb.reshape(1, D_OUT).astype(jnp.float32)


@jax.jit
def aggregation_forward(x, w_comb, b_comb):
    """x: (B, agg_num, 2, 17) -> (B, 34) float32.

    Equivalent to torch: Linear1(Linear(flatten(x, 1))).
    """
    B = x.shape[0]
    x_flat = x.reshape(B, -1)          # torch.flatten(x, 1); free view for contiguous x
    assert x_flat.shape[1] == D_IN

    TB = min(MAX_TB, _round_up(B, 8))
    grid = (pl.cdiv(B, TB),)           # ragged last tile handled by Pallas masking

    return pl.pallas_call(
        aggregation_kernel,
        out_shape=jax.ShapeDtypeStruct((B, D_OUT), jnp.float32),
        grid=grid,
        in_specs=[
            pl.BlockSpec((TB, D_IN), lambda i: (i, 0)),
            pl.BlockSpec((D_IN, D_OUT), lambda i: (0, 0)),   # VMEM-resident weights
            pl.BlockSpec((1, D_OUT), lambda i: (0, 0)),      # VMEM-resident bias
        ],
        out_specs=pl.BlockSpec((TB, D_OUT), lambda i: (i, 0)),
        compiler_params=pltpu.CompilerParams(
            dimension_semantics=("parallel",),               # megacore sharding on v7x
        ),
    )(x_flat, w_comb, b_comb)


def init_params(key):
    """Deterministic init mimicking nn.Linear defaults (uniform +/- 1/sqrt(fan_in))."""
    k1, k2, k3, k4 = jax.random.split(key, 4)
    bound1 = 1.0 / (D_IN ** 0.5)
    bound2 = 1.0 / (D_HID ** 0.5)
    w1 = jax.random.uniform(k1, (D_IN, D_HID), jnp.float32, -bound1, bound1)
    b1 = jax.random.uniform(k2, (D_HID,), jnp.float32, -bound1, bound1)
    w2 = jax.random.uniform(k3, (D_HID, D_OUT), jnp.float32, -bound2, bound2)
    b2 = jax.random.uniform(k4, (D_OUT,), jnp.float32, -bound2, bound2)
    return w1, b1, w2, b2


if __name__ == "__main__":
    key = jax.random.PRNGKey(0)
    kx, kp, kx2 = jax.random.split(key, 3)
    w1, b1, w2, b2 = init_params(kp)

    # Fold once at parameter-build time (out of the per-call path).
    w_comb, b_comb = fold_params(w1, b1, w2, b2)

    # ---- small-shape check (B=2): single ragged grid step -------------------
    B = 2
    x = jax.random.normal(kx, (B, AGG_NUM, 2, 17), dtype=jnp.float32)
    out = jax.block_until_ready(aggregation_forward(x, w_comb, b_comb))
    ref = (x.reshape(B, -1) @ w1 + b1) @ w2 + b2        # unfused two-layer reference
    assert out.shape == (B, D_OUT)
    assert jnp.allclose(out, ref, atol=1e-3, rtol=1e-3)

    # ---- larger batch, B NOT a multiple of TB: exercises deep grid + masking
    B2 = 3000                                           # 3000 = 11*256 + 184
    x2 = jax.random.normal(kx2, (B2, AGG_NUM, 2, 17), dtype=jnp.float32)
    out2 = jax.block_until_ready(aggregation_forward(x2, w_comb, b_comb))
    ref2 = (x2.reshape(B2, -1) @ w1 + b1) @ w2 + b2
    assert out2.shape == (B2, D_OUT)
    assert jnp.allclose(out2, ref2, atol=1e-3, rtol=1e-3)

    # ---- natively-bf16 input path (no wrapper cast in the hot path;
    #      weights folded to bf16 once; f32 accumulation; approximate) --------
    w_bf16, b_bf16 = fold_params(w1, b1, w2, b2, compute_dtype=jnp.bfloat16)
    x2_bf16 = x2.astype(jnp.bfloat16)                   # simulates upstream bf16 producer
    out_bf16 = jax.block_until_ready(aggregation_forward(x2_bf16, w_bf16, b_bf16))
    assert jnp.allclose(out_bf16, ref2, atol=5e-2, rtol=5e-2)

    print("KERNEL_OK")
</pallas_src>

<mosaic_0001>
module attributes {stable_mosaic.version = 11 : i64} {
  func.func @aggregation_kernel(%arg0: i32, %arg1: memref<8x136xf32, #tpu.memory_space<vmem>>, %arg2: memref<136x34xf32, #tpu.memory_space<vmem>>, %arg3: memref<1x34xf32, #tpu.memory_space<vmem>>, %arg4: memref<8x34xf32, #tpu.memory_space<vmem>>) attributes {dimension_semantics = [#tpu.dimension_semantics<parallel>], iteration_bounds = array<i64: 1>, scalar_prefetch = 0 : i64, scratch_operands = 0 : i64, tpu.core_type = #tpu.core_type<tc>, window_params = [{transform_indices = @transform_0, window_bounds = array<i64: 8, 136>}, {pipeline_mode = #tpu.pipeline_mode<synchronous>, transform_indices = @transform_1, window_bounds = array<i64: 136, 34>}, {pipeline_mode = #tpu.pipeline_mode<synchronous>, transform_indices = @transform_2, window_bounds = array<i64: 1, 34>}, {transform_indices = @transform_3, window_bounds = array<i64: 8, 34>}]} {
    %c0 = arith.constant 0 : index
    %c0_0 = arith.constant 0 : index
    %0 = vector.load %arg1[%c0, %c0_0] : memref<8x136xf32, #tpu.memory_space<vmem>>, vector<8x136xf32>
    %c0_1 = arith.constant 0 : index
    %c0_2 = arith.constant 0 : index
    %1 = vector.load %arg2[%c0_1, %c0_2] : memref<136x34xf32, #tpu.memory_space<vmem>>, vector<136x34xf32>
    %cst = arith.constant dense<0.000000e+00> : vector<8x34xf32>
    %2 = tpu.matmul %0, %1, %cst {dimension_numbers = #tpu.dot_dimension_numbers<[1], [0], [0], [1], [0, 0, 1, 1], [], []>} : vector<8x136xf32>, vector<136x34xf32>, vector<8x34xf32> -> vector<8x34xf32>
    %c0_3 = arith.constant 0 : index
    %c0_4 = arith.constant 0 : index
    %3 = vector.load %arg3[%c0_3, %c0_4] : memref<1x34xf32, #tpu.memory_space<vmem>>, vector<1x34xf32>
    %4 = vector.broadcast %3 : vector<1x34xf32> to vector<8x34xf32>
    %5 = arith.addf %2, %4 : vector<8x34xf32>
    %c0_5 = arith.constant 0 : index
    %c0_6 = arith.constant 0 : index
    %6 = vector.load %arg4[%c0_5, %c0_6] : memref<8x34xf32, #tpu.memory_space<vmem>>, vector<8x34xf32>
    tpu.vector_store %arg4[%c0_5, %c0_6], %5 {strides = array<i32>} : memref<8x34xf32, #tpu.memory_space<vmem>>, vector<8x34xf32>,
    return
  }
  func.func @transform_0(%arg0: i32) -> (i32, i32) {
    %c0_i32 = arith.constant 0 : i32
    %c0_i32_0 = arith.constant 0 : i32
    return %arg0, %c0_i32 : i32, i32
  }
  func.func @transform_1(%arg0: i32) -> (i32, i32) {
    %c0_i32 = arith.constant 0 : i32
    %c0_i32_0 = arith.constant 0 : i32
    %c0_i32_1 = arith.constant 0 : i32
    return %c0_i32, %c0_i32_0 : i32, i32
  }
  func.func @transform_2(%arg0: i32) -> (i32, i32) {
    %c0_i32 = arith.constant 0 : i32
    %c0_i32_0 = arith.constant 0 : i32
    %c0_i32_1 = arith.constant 0 : i32
    return %c0_i32, %c0_i32_0 : i32, i32
  }
  func.func @transform_3(%arg0: i32) -> (i32, i32) {
    %c0_i32 = arith.constant 0 : i32
    %c0_i32_0 = arith.constant 0 : i32
    return %arg0, %c0_i32 : i32, i32
  }
}

</mosaic_0001>

<bundles_post_ra>
// kernel: aggregation_forward.1
= control target key start
LH: loop header
LB: loop body
LE: loop exit
PB: predicated region body
PF: predicated region fallthrough
CT: control target
= control target key end

     0   :  { %8 = vsyncpa [#allocation3], 0  ;;  %v190_v1 = vmov 0.0   ;;  %vm66_vm0 = vcmask 64512   ;;  %vm139_vm1 = vcmask 277504   ;;  %s277_s0 = inlined_call_operand.vmem [shape: f32[2,136], index: 0, kind: input, shape index: {}]   ;;  %s278_s1 = inlined_call_operand.vmem [shape: f32[136,34], index: 1, kind: input, shape index: {}]   ;;  %s279_s2 = inlined_call_operand.vmem [shape: f32[1,34], index: 2, kind: input, shape index: {}]   ;;  %s280_s3 = inlined_call_operand.hbm [shape: f32[2,34], index: 3, kind: output, shape index: {}]  }
   0x1   :  { %v34_v0 = vld [vmem:[%s278_s1 + $0x78] sm:$0xff]  ;;  %69 = vmatprep.subr.mxu0 %v190_v1  ;;  %v33_v2 = vld [vmem:[%s278_s1 + $0x70] sm:$0xff]  ;;  %v32_v3 = vld [vmem:[%s278_s1 + $0x68] sm:$0xff] }
   0x2   :  { %70 = vmatpush1.msra.mxu0 %v34_v0  ;;  %v31_v4 = vld [vmem:[%s278_s1 + $0x60] sm:$0xff]  ;;  %v30_v5 = vld [vmem:[%s278_s1 + $0x58] sm:$0xff]  ;;  %v167_v7 = vld.sshfl [vmem:[%s277_s0 + $0x8] sm:$0xff pattern:$0x76325410] }
   0x3   :  { %71 = vmatprep.subr.mxu0 %v190_v1  ;;  %v166_v6 = vld.sshfl [vmem:[%s277_s0] sm:$0xff pattern:$0x76325410]  ;;  %v29_v8 = vld [vmem:[%s278_s1 + $0x50] sm:$0xff]  ;;  %v28_v9 = vld [vmem:[%s278_s1 + $0x48] sm:$0xff] }
   0x4   :  { %72 = vmatpush1.msra.mxu0 %v33_v2  ;;  %v64_v10 = vcombine.high %v166_v6, %v167_v7  ;;  %v27_v11 = vld [vmem:[%s278_s1 + $0x40] sm:$0xff]  ;;  %v26_v12 = vld [vmem:[%s278_s1 + $0x38] sm:$0xff]  ;;  %v25_v13 = vld [vmem:[%s278_s1 + $0x30] sm:$0xff]  ;;  %v63_v21 = vcombine.low %v166_v6, %v167_v7 }
   0x5   :  { %73 = vmatprep.subr.mxu0 %v190_v1  ;;  %v24_v14 = vld [vmem:[%s278_s1 + $0x28] sm:$0xff]  ;;  %v23_v15 = vld [vmem:[%s278_s1 + $0x20] sm:$0xff]  ;;  %v22_v16 = vld [vmem:[%s278_s1 + $0x18] sm:$0xff] }
   0x6   :  { %74 = vmatpush1.msra.mxu0 %v32_v3  ;;  %158 = vmatprep.mubr.msk.f32.mxu0 %vm66_vm0, %v64_v10  ;;  %v21_v17 = vld [vmem:[%s278_s1 + $0x10] sm:$0xff]  ;;  %v20_v18 = vld [vmem:[%s278_s1 + $0x8] sm:$0xff]  ;;  %v19_v19 = vld [vmem:[%s278_s1] sm:$0xff] }
   0x7   :  { %75 = vmatprep.subr.mxu0 %v190_v1  ;;  %v35_v20 = vld [vmem:[%s278_s1 + $0x80] sm:$0xff] }
   0x8   :  { %76 = vmatpush1.msra.mxu0 %v31_v4  ;;  %v157_v22 = vld [vmem:[%s279_s2] ss:$0 sm:$0xff] }
   0x9   :  { %77 = vmatprep.subr.mxu0 %v190_v1 }
   0xa   :  { %78 = vmatpush1.msra.mxu0 %v30_v5 }
   0xb   :  { %79 = vmatprep.subr.mxu0 %v190_v1 }
   0xc   :  { %80 = vmatpush1.msra.mxu0 %v29_v8 }
   0xd   :  { %81 = vmatprep.subr.mxu0 %v190_v1 }
   0xe   :  { %82 = vmatpush1.msra.mxu0 %v28_v9 }
   0xf   :  { %83 = vmatprep.subr.mxu0 %v190_v1 }
  0x10   :  { %84 = vmatpush1.msra.mxu0 %v27_v11 }
  0x11   :  { %85 = vmatprep.subr.mxu0 %v190_v1 }
  0x12   :  { %86 = vmatpush1.msra.mxu0 %v26_v12 }
  0x13   :  { %87 = vmatprep.subr.mxu0 %v190_v1 }
  0x14   :  { %88 = vmatpush1.msra.mxu0 %v25_v13 }
  0x15   :  { %89 = vmatprep.subr.mxu0 %v190_v1 }
  0x16   :  { %90 = vmatpush1.msra.mxu0 %v24_v14 }
  0x17   :  { %91 = vmatprep.subr.mxu0 %v190_v1 }
  0x18   :  { %92 = vmatpush1.msra.mxu0 %v23_v15 }
  0x19   :  { %93 = vmatprep.subr.mxu0 %v190_v1 }
  0x1a   :  { %94 = vmatpush1.msra.mxu0 %v22_v16 }
  0x1b   :  { %95 = vmatprep.subr.mxu0 %v190_v1 }
  0x1c   :  { %96 = vmatpush1.msra.mxu0 %v21_v17 }
  0x1d   :  { %97 = vmatprep.subr.mxu0 %v190_v1 }
  0x1e   :  { %98 = vmatpush1.msra.mxu0 %v20_v18 }
  0x1f   :  { %99 = vmatprep.subr.mxu0 %v190_v1 }
  0x20   :  { %100 = vmatpush1.msra.mxu0 %v19_v19 }
  0x21   :  { %131 = vmatprep.subr.mxu0 %v190_v1 }
  0x22   :  { %132 = vmatpush2.msra.mxu0 %v35_v20 }
  0x23   :  { %134 = vmatmul.mubr.f32.vlgmr.msra.gmra.mxu0 %v63_v21 }
  0xe3   :  { %v135_v23 = vpop.f32.mrf.mxu0 }
  0xe4   :  { %v136_v24 = vadd.f32 %v157_v22, %v135_v23 }
  0xe5   :  { %v137_v25 = vpop.f32.mrf.mxu0 }
  0xe6   :  { %140 = vst.msk [vmem:[#allocation2] sm:$0xff] %vm139_vm1, %v136_v24 }
  0xe7   :  { %145 = vsyncadd [#allocation3], 96  ;;  %s191_s24 = smov [#allocation2]  }
  0xe8   :  { %s146_s25 = sshll.u32 %s191_s24, 4  ;;  %s147_s25 = int_to_ptr.vmem [resolvable:$true] %s146_s25 }
  0xe9   :  { %s168_s26 = scalar_lea.vmem %s147_s25, 32  ;;  %s172_s1 = scalar_lea.vmem %s147_s25, 128 }
  0xea   :  { %p169_p0 = scmp.ne.s32.totalorder %s147_s25, %s168_s26  ;;  %p173_p1 = scmp.lt.s32.totalorder %s147_s25, %s147_s25 }
  0xeb   :  { %p174_p2 = scmp.lt.s32.totalorder %s172_s1, %s168_s26 }
  0xed   :  { %p175_p3 = por %p174_p2, %p173_p1 }
  0xef   :  { %p176_p4 = pnand %p175_p3, %p169_p0 }
  0xf1   :  { %179 = shalt.err (!%p176_p4)
}
  0xf2   :  { %s192_s27 = smov 32   ;;  %s193_s28 = smov 2  }
  0xf3   :  { %152 = dma.vmem_to_hbm [thread:$0]  %s147_s25, 32, %s280_s3, [#allocation3], %s192_s27, %s192_s27, %s193_s28  }
  0xf4   :  { %188 = dma.done.wait [#allocation3], 128  }
  0xf5   :  { %189 = vsyncadd [#allocation3], 4294967168 }
  0xf6   :  { %156 = vsyncpa [#allocation3], 1 }

</bundles_post_ra>
